<compile_context>
chip_gen: v7x
topology: tpu7x:2x2x1
jax: 0.10.0
libtpu: 0.0.40
codegen_flags: <defaults>
</compile_context>

<pallas_src>
import math

import jax
import jax.numpy as jnp
from jax import lax
from jax.experimental import pallas as pl
from jax.experimental.pallas import tpu as pltpu


def _round_up(n: int, m: int) -> int:
    return ((n + m - 1) // m) * m


def _pick_vmem_limit() -> int:
    """Per-generation scoped-VMEM request (headroom left for Mosaic scratch)."""
    try:
        phys = int(pltpu.get_tpu_info().vmem_capacity_bytes)
    except Exception:
        phys = 64 * 1024 * 1024          # conservative fallback: v7x per-TC VMEM
    # ~50 MiB on v7x (64 MiB physical), ~100 MiB on v5e/v6e (128 MiB physical).
    return min(int(phys * 0.78), 100 * 1024 * 1024)


# ----------------------------------------------------------------------------
# Kernel: bf16 matmul accumulated into the f32 output block + log_softmax.
# ----------------------------------------------------------------------------
def proj_logsoftmax_kernel(x_ref, w_ref, b_ref, o_ref):
    # x_ref: (TM, TK)  input rows (cast to bf16 for the MXU)
    # w_ref: (V,  TK)  bf16 weight slab, PyTorch (vocab, d_model) layout
    # b_ref: (1,  V)   f32 bias row (zeros when the module has bias=False)
    # o_ref: (TM, V)   f32 output; doubles as the accumulator across k
    k = pl.program_id(1)

    @pl.when(k == 0)
    def _():
        o_ref[...] = jnp.zeros(o_ref.shape, o_ref.dtype) + b_ref[...]

    # NT contraction over the shared last (d_model) dim -- no weight transpose.
    o_ref[...] += lax.dot_general(
        x_ref[...].astype(jnp.bfloat16),
        w_ref[...],
        dimension_numbers=(((1,), (1,)), ((), ())),
        preferred_element_type=jnp.float32,
    )

    @pl.when(k == pl.num_programs(1) - 1)
    def _():
        # Numerically stable log-softmax over the full (lane-dense) vocab axis.
        z = o_ref[...]
        m = jnp.max(z, axis=-1, keepdims=True)
        s = jnp.sum(jnp.exp(z - m), axis=-1, keepdims=True)
        o_ref[...] = z - (m + jnp.log(s))


# ----------------------------------------------------------------------------
# Wrapper
# ----------------------------------------------------------------------------
def projection_layer_forward(x: jnp.ndarray, weight: jnp.ndarray,
                             bias: jnp.ndarray | None = None,
                             *, tm_max: int = 256) -> jnp.ndarray:
    """x: (..., d_model); weight: (vocab, d_model) PyTorch Linear layout.

    Returns log_softmax(x @ weight.T [+ bias], axis=-1) with shape (..., vocab).
    """
    *lead, D = x.shape
    V, D2 = weight.shape
    assert D == D2, "d_model mismatch between x and weight"

    x2 = x.reshape(-1, D)
    N = x2.shape[0]

    # Stream W as bf16 (halves HBM traffic, native MXU rate); keep (V, D)
    # layout so no per-call transpose pass over HBM is needed.
    # TODO(synk): in a real model, materialize the bf16 copy once at param init.
    w_bf16 = weight.astype(jnp.bfloat16)
    b_row = (jnp.zeros((1, V), jnp.float32) if bias is None
             else jnp.asarray(bias, jnp.float32).reshape(1, V))

    limit = _pick_vmem_limit()
    budget = limit - max(2 * 1024 * 1024, limit // 16)   # Mosaic-internal headroom

    def fits(tm: int, tk: int) -> bool:
        x_bytes = 2 * tm * tk * 4            # double-buffered x tile (f32)
        w_bytes = 2 * V * tk * 2             # double-buffered bf16 weight slab
        o_bytes = 2 * tm * V * 4             # f32 output block (the accumulator)
        b_bytes = 2 * V * 4                  # bias row
        return x_bytes + w_bytes + o_bytes + b_bytes <= budget

    # Row-tile candidates: multiples of 8, capped so there are >= 2 row tiles
    # (keeps both v7x TensorCores busy even for small batches / decode).
    tm_desired = min(tm_max, _round_up(N, 8))
    if N >= 16:
        tm_desired = min(tm_desired, _round_up(-(-N // 2), 8))
    tm_candidates = []
    t = tm_desired
    while True:
        tm_candidates.append(t)
        if t <= 8:
            break
        t = max(8, (t // 2) // 8 * 8)

    tm_eff = tk_eff = None
    # Phase 1: single full-D reduction block -> weight is DMA'd once and stays
    # VMEM-resident across all row tiles (kills W re-streaming, the dominant
    # HBM cost). Only accept reasonably large TM so MXU occupancy stays sane.
    for t in tm_candidates:
        if t < min(64, tm_desired):
            break
        if fits(t, D):
            tm_eff, tk_eff = t, D
            break
    # Phase 2: k-tile the reduction; shrink tk before TM (per perf review).
    if tm_eff is None:
        tk_candidates = [c for c in (2048, 1024, 512, 256, 128) if c < D]
        for t in tm_candidates:
            for c in tk_candidates:
                if fits(t, c):
                    tm_eff, tk_eff = t, c
                    break
            if tm_eff is not None:
                break
    if tm_eff is None:
        # TODO(synk): very large vocab needs a vocab-tiled online log-softmax
        # (running max / running sum-exp) instead of one full-V output block.
        raise NotImplementedError(
            f"vocab={V} too large for a full-vocab output block within "
            f"{budget} bytes of VMEM; vocab-tiled log-softmax not implemented")

    # Pad rows to a multiple of the row tile and d_model to a multiple of tk
    # (zero-padded columns contribute nothing to the contraction; padded rows
    # are sliced off after the call).
    n_pad = _round_up(N, tm_eff)
    d_pad = _round_up(D, tk_eff)
    if n_pad != N or d_pad != D:
        x2 = jnp.pad(x2, ((0, n_pad - N), (0, d_pad - D)))
    if d_pad != D:
        w_bf16 = jnp.pad(w_bf16, ((0, 0), (0, d_pad - D)))

    grid = (n_pad // tm_eff, d_pad // tk_eff)

    out = pl.pallas_call(
        proj_logsoftmax_kernel,
        out_shape=jax.ShapeDtypeStruct((n_pad, V), jnp.float32),
        grid_spec=pltpu.PrefetchScalarGridSpec(
            num_scalar_prefetch=0,
            grid=grid,
            in_specs=[
                pl.BlockSpec((tm_eff, tk_eff), lambda i, k: (i, k)),   # x rows
                pl.BlockSpec((V, tk_eff), lambda i, k: (0, k)),        # W slab
                pl.BlockSpec((1, V), lambda i, k: (0, 0)),             # bias row
            ],
            out_specs=pl.BlockSpec((tm_eff, V), lambda i, k: (i, 0)),
        ),
        compiler_params=pltpu.CompilerParams(
            dimension_semantics=("parallel", "arbitrary"),
            vmem_limit_bytes=limit,
        ),
    )(x2, w_bf16, b_row)

    out = out[:N]
    if out.dtype != x.dtype:
        out = out.astype(x.dtype)
    return out.reshape(*lead, V)


# ----------------------------------------------------------------------------
# Demo / self-check
# ----------------------------------------------------------------------------
if __name__ == "__main__":
    B, S, d_model, vocab_size = 2, 8, 32, 512   # vocab multiple of 128 -> lane-dense

    key = jax.random.PRNGKey(0)
    kx, kw = jax.random.split(key)
    x = jax.random.normal(kx, (B, S, d_model), dtype=jnp.float32)

    # PyTorch nn.Linear weight layout: (out_features, in_features) = (V, D)
    bound = 1.0 / math.sqrt(d_model)
    weight = jax.random.uniform(
        kw, (vocab_size, d_model), dtype=jnp.float32, minval=-bound, maxval=bound
    )

    out = projection_layer_forward(x, weight)
    out = jax.block_until_ready(out)

    # Pure-JAX f32 reference of the PyTorch semantics (bias=False default).
    ref = jax.nn.log_softmax(jnp.einsum("bsd,vd->bsv", x, weight), axis=-1)

    assert out.shape == (B, S, vocab_size)
    assert out.dtype == x.dtype
    # bf16 weight/activation streaming inside the kernel (f32 accumulation and
    # f32 softmax) -> slightly looser tolerance than an all-f32 comparison.
    assert bool(jnp.allclose(out, ref, atol=2e-2, rtol=2e-2))

    print("KERNEL_OK")
</pallas_src>

<mosaic_0001>
module attributes {stable_mosaic.version = 11 : i64} {
  func.func @proj_logsoftmax_kernel(%arg0: i32, %arg1: i32, %arg2: memref<8x32xf32, #tpu.memory_space<vmem>>, %arg3: memref<512x32xbf16, #tpu.memory_space<vmem>>, %arg4: memref<1x512xf32, #tpu.memory_space<vmem>>, %arg5: memref<8x512xf32, #tpu.memory_space<vmem>>) attributes {dimension_semantics = [#tpu.dimension_semantics<parallel>, #tpu.dimension_semantics<arbitrary>], iteration_bounds = array<i64: 2, 1>, scalar_prefetch = 0 : i64, scratch_operands = 0 : i64, tpu.core_type = #tpu.core_type<tc>, window_params = [{transform_indices = @transform_0, window_bounds = array<i64: 8, 32>}, {transform_indices = @transform_1, window_bounds = array<i64: 512, 32>}, {pipeline_mode = #tpu.pipeline_mode<synchronous>, transform_indices = @transform_2, window_bounds = array<i64: 1, 512>}, {transform_indices = @transform_3, window_bounds = array<i64: 8, 512>}]} {
    %c0_i32 = arith.constant 0 : i32
    %0 = arith.cmpi eq, %arg1, %c0_i32 : i32
    %1 = arith.extui %0 : i1 to i32
    %c0_i32_0 = arith.constant 0 : i32
    %2 = arith.cmpi ne, %1, %c0_i32_0 : i32
    scf.if %2 {
      %cst_10 = arith.constant 0.000000e+00 : f32
      %13 = vector.broadcast %cst_10 : f32 to vector<8x512xf32>
      %c0_11 = arith.constant 0 : index
      %c0_12 = arith.constant 0 : index
      %14 = vector.load %arg4[%c0_11, %c0_12] : memref<1x512xf32, #tpu.memory_space<vmem>>, vector<1x512xf32>
      %15 = vector.broadcast %14 : vector<1x512xf32> to vector<8x512xf32>
      %16 = arith.addf %13, %15 : vector<8x512xf32>
      %c0_13 = arith.constant 0 : index
      %c0_14 = arith.constant 0 : index
      %17 = vector.load %arg5[%c0_13, %c0_14] : memref<8x512xf32, #tpu.memory_space<vmem>>, vector<8x512xf32>
      tpu.vector_store %arg5[%c0_13, %c0_14], %16 {strides = array<i32>} : memref<8x512xf32, #tpu.memory_space<vmem>>, vector<8x512xf32>,
    } else {
    }
    %c0 = arith.constant 0 : index
    %c0_1 = arith.constant 0 : index
    %3 = vector.load %arg5[%c0, %c0_1] : memref<8x512xf32, #tpu.memory_space<vmem>>, vector<8x512xf32>
    %c0_2 = arith.constant 0 : index
    %c0_3 = arith.constant 0 : index
    %4 = vector.load %arg2[%c0_2, %c0_3] : memref<8x32xf32, #tpu.memory_space<vmem>>, vector<8x32xf32>
    %5 = arith.truncf %4 : vector<8x32xf32> to vector<8x32xbf16>
    %c0_4 = arith.constant 0 : index
    %c0_5 = arith.constant 0 : index
    %6 = vector.load %arg3[%c0_4, %c0_5] : memref<512x32xbf16, #tpu.memory_space<vmem>>, vector<512x32xbf16>
    %cst = arith.constant dense<0.000000e+00> : vector<8x512xf32>
    %7 = tpu.matmul %5, %6, %cst {dimension_numbers = #tpu.dot_dimension_numbers<[1], [1], [0], [0], [0, 0, 1, 0], [], []>} : vector<8x32xbf16>, vector<512x32xbf16>, vector<8x512xf32> -> vector<8x512xf32>
    %8 = arith.addf %3, %7 : vector<8x512xf32>
    %c0_6 = arith.constant 0 : index
    %c0_7 = arith.constant 0 : index
    %9 = vector.load %arg5[%c0_6, %c0_7] : memref<8x512xf32, #tpu.memory_space<vmem>>, vector<8x512xf32>
    tpu.vector_store %arg5[%c0_6, %c0_7], %8 {strides = array<i32>} : memref<8x512xf32, #tpu.memory_space<vmem>>, vector<8x512xf32>,
    %c0_i32_8 = arith.constant 0 : i32
    %10 = arith.cmpi eq, %arg1, %c0_i32_8 : i32
    %11 = arith.extui %10 : i1 to i32
    %c0_i32_9 = arith.constant 0 : i32
    %12 = arith.cmpi ne, %11, %c0_i32_9 : i32
    scf.if %12 {
      %c0_10 = arith.constant 0 : index
      %c0_11 = arith.constant 0 : index
      %13 = vector.load %arg5[%c0_10, %c0_11] : memref<8x512xf32, #tpu.memory_space<vmem>>, vector<8x512xf32>
      %cst_12 = arith.constant dense<0xFF800000> : vector<8xf32>
      %14 = vector.multi_reduction <maximumf>, %13, %cst_12 [1] : vector<8x512xf32> to vector<8xf32>
      %15 = vector.shape_cast %14 : vector<8xf32> to vector<8x1xf32>
      %16 = vector.broadcast %15 : vector<8x1xf32> to vector<8x512xf32>
      %17 = arith.subf %13, %16 : vector<8x512xf32>
      %18 = math.exp %17 : vector<8x512xf32>
      %cst_13 = arith.constant dense<0.000000e+00> : vector<8xf32>
      %19 = vector.multi_reduction <add>, %18, %cst_13 [1] : vector<8x512xf32> to vector<8xf32>
      %20 = vector.shape_cast %19 : vector<8xf32> to vector<8x1xf32>
      %21 = math.log %20 : vector<8x1xf32>
      %22 = arith.addf %15, %21 : vector<8x1xf32>
      %23 = vector.broadcast %22 : vector<8x1xf32> to vector<8x512xf32>
      %24 = arith.subf %13, %23 : vector<8x512xf32>
      %c0_14 = arith.constant 0 : index
      %c0_15 = arith.constant 0 : index
      %25 = vector.load %arg5[%c0_14, %c0_15] : memref<8x512xf32, #tpu.memory_space<vmem>>, vector<8x512xf32>
      tpu.vector_store %arg5[%c0_14, %c0_15], %24 {strides = array<i32>} : memref<8x512xf32, #tpu.memory_space<vmem>>, vector<8x512xf32>,
    } else {
    }
    return
  }
  func.func @transform_0(%arg0: i32, %arg1: i32) -> (i32, i32) {
    %c0_i32 = arith.constant 0 : i32
    return %arg0, %arg1 : i32, i32
  }
  func.func @transform_1(%arg0: i32, %arg1: i32) -> (i32, i32) {
    %c0_i32 = arith.constant 0 : i32
    %c0_i32_0 = arith.constant 0 : i32
    return %c0_i32, %arg1 : i32, i32
  }
  func.func @transform_2(%arg0: i32, %arg1: i32) -> (i32, i32) {
    %c0_i32 = arith.constant 0 : i32
    %c0_i32_0 = arith.constant 0 : i32
    %c0_i32_1 = arith.constant 0 : i32
    return %c0_i32, %c0_i32_0 : i32, i32
  }
  func.func @transform_3(%arg0: i32, %arg1: i32) -> (i32, i32) {
    %c0_i32 = arith.constant 0 : i32
    %c0_i32_0 = arith.constant 0 : i32
    return %arg0, %c0_i32 : i32, i32
  }
}

</mosaic_0001>

<bundles_post_ra>
// kernel: tpu_custom_call.1
= control target key start
LH: loop header
LB: loop body
LE: loop exit
PB: predicated region body
PF: predicated region fallthrough
CT: control target
= control target key end

     0   :  { %8 = vsyncpa [#allocation3], 0  ;;  %s1346_s0 = inlined_call_operand.vmem [shape: f32[16,32], index: 0, kind: input, shape index: {}]   ;;  %s1347_s1 = inlined_call_operand.vmem [shape: bf16[512,32], index: 1, kind: input, shape index: {}]   ;;  %s1348_s2 = inlined_call_operand.vmem [shape: f32[1,512], index: 2, kind: input, shape index: {}]   ;;  %s1349_s3 = inlined_call_operand.hbm [shape: f32[16,512], index: 3, kind: output, shape index: {}]  }
   0x1   :  { %10 = vsyncpa [#allocation3 + $0x1], 0  ;;  %s1099_s12 = smov 0   ;;  %s1101_s13 = smov 0  }
   0x2   :  { %s1103_s14 = smov 0   ;;  %s1105_s15 = smov 0  }
   0x3   :  { %s1107_s16 = smov 0   ;;  %s1109_s17 = smov 0  }
   0x4 LB: > { %s801_s18 = sadd.s32 4294967295, %s1076_s17   ;;  %s802_s19 = sadd.s32 4294967294, %s1076_s17   ;;  %s1076_s17 = sphi %s1109_s17, %s16_s17   ;;  %s1072_s16 = sphi %s1107_s16, %s1356_s16   ;;  %s1068_s15 = sphi %s1105_s15, %s1355_s15   ;;  %s1064_s14 = sphi %s1103_s14, %s1354_s14   ;;  %s1060_s13 = sphi %s1101_s13, %s1353_s13   ;;  %s1056_s12 = sphi %s1099_s12, %s1352_s12  }
   0x5   : > { %s28_s20 = sadd.s32 1, %s1072_s16  ;;  %s110_s21 = sadd.s32 1, %s1064_s14 }
   0x6   : > { %p30_p0 = scmp.ge.s32.totalorder %s28_s20, 2  ;;  %p120_p1 = scmp.ne.s32.totalorder %s1064_s14, %s1060_s13 }
   0x7   : > { %p121_p2 = scmp.eq.s32.totalorder %s801_s18, 1  ;;  %p126_p3 = scmp.ne.s32.totalorder %s1060_s13, %s1056_s12 }
   0x8   : > { %s1358_s20 = smov (%p30_p0, %s28_s20), 0  ;;  %p127_p5 = scmp.eq.s32.totalorder %s802_s19, 1 }
   0x9   : > { %p1139_p4 = por %p121_p2, %p120_p1  ;;  %s107_s23 = ssub.s32 %s1072_s16, %s1358_s20 }
   0xa   : > { %p806_p6 = scmp.ge.s32.totalorder %s1076_s17, 1  ;;  %p108_p7 = scmp.eq.s32.totalorder %s107_s23, 0 }
   0xb   : > { %p1146_p8 = por %p127_p5, %p126_p3  ;;  %p165_p9 = scmp.lt.s32.totalorder %s1076_s17, 3 }
   0xc   : > { %s1152_s25 = scalar_select %p108_p7, %s1064_s14, %s110_s21  }
   0xd   : > { %p166_p10 = pnand %p806_p6, %p165_p9 }
   0xe   : > { %v956_v0 = vld [vmem:[%s1347_s1 + $0x40] sm:$0xff] (!%p166_p10)   ;;  %vm471_vm0 = vcmask (!%p166_p10), 261120   ;;  %v960_v5 = vld [vmem:[%s1347_s1 + $0x48] sm:$0xff] (!%p166_p10)   ;;  %v964_v11 = vld [vmem:[%s1347_s1 + $0x50] sm:$0xff] (!%p166_p10)   ;;  %p195_p11 = scmp.lt.s32.totalorder (!%p166_p10), %s1068_s15, 1  ;;  %v213_v50 = vlaneseq (!%p166_p10)  ;;  %s192_s29 = sand.u32 (!%p166_p10), 1, %s1060_s13  }
   0xf   : > { %169 = sbr.rel (%p166_p10) target bundleno = 639 (0x27f), region = 32  ;;  %v957_v1 = vld [vmem:[%s1347_s1 + $0xc0] sm:$0xff] (!%p166_p10)   ;;  %885 = vmatprep.subr.msk.bf16.mxu0 (!%p166_p10), %vm471_vm0, %v956_v0  ;;  %v961_v7 = vld [vmem:[%s1347_s1 + $0xc8] sm:$0xff] (!%p166_p10)   ;;  %v965_v13 = vld [vmem:[%s1347_s1 + $0xd0] sm:$0xff] (!%p166_p10)   ;;  %s807_s30 = sshll.u32 (!%p166_p10), %s192_s29, 5 }
  0x10   : > { %v958_v2 = vld [vmem:[%s1347_s1] sm:$0xff] (!%p166_p10)   ;;  %893 = vmatprep.subr.msk.bf16.mxu1 (!%p166_p10), %vm471_vm0, %v957_v1  ;;  %v962_v8 = vld [vmem:[%s1347_s1 + $0x8] sm:$0xff] (!%p166_p10)   ;;  %v966_v14 = vld [vmem:[%s1347_s1 + $0x10] sm:$0xff] (!%p166_p10)   ;;  %v214_v51 = vshrl.u32 (!%p166_p10), %v213_v50, 7  ;;  %s848_s4 = sshll.u32 (!%p166_p10), %s1068_s15, 9  ;;  %s1078_s11 = smov (!%p166_p10), [#allocation2]  }
  0x11   : > { %v959_v3 = vld [vmem:[%s1347_s1 + $0x80] sm:$0xff] (!%p166_p10)   ;;  %v476_v4 = vsel (!%p166_p10), %vm471_vm0, %v958_v2, 0  ;;  %v963_v9 = vld [vmem:[%s1347_s1 + $0x88] sm:$0xff] (!%p166_p10)   ;;  %v479_v10 = vsel (!%p166_p10), %vm471_vm0, %v962_v8, 0  ;;  %v967_v15 = vld [vmem:[%s1347_s1 + $0x90] sm:$0xff] (!%p166_p10)   ;;  %v482_v16 = vsel (!%p166_p10), %vm471_vm0, %v966_v14, 0  ;;  %s1299_s9 = scalar_lea.hbm (!%p166_p10), %s1349_s3, %s848_s4 }
  0x12   : > { %850 = vmatpush3.bf16.xpose.msra.mxu0 (!%p166_p10), %v476_v4  ;;  %v524_v6 = vsel (!%p166_p10), %vm471_vm0, %v959_v3, 0  ;;  %v527_v12 = vsel (!%p166_p10), %vm471_vm0, %v963_v9, 0  ;;  %v968_v17 = vld [vmem:[%s1347_s1 + $0x58] sm:$0xff] (!%p166_p10)   ;;  %v530_v18 = vsel (!%p166_p10), %vm471_vm0, %v967_v15, 0  ;;  %v972_v23 = vld [vmem:[%s1347_s1 + $0x60] sm:$0xff] (!%p166_p10)   ;;  %v976_v31 = vld [vmem:[%s1347_s1 + $0x68] sm:$0xff] (!%p166_p10)  }
  0x13   : > { %868 = vmatpush3.bf16.xpose.msra.mxu1 (!%p166_p10), %v524_v6  ;;  %886 = vmatprep.subr.msk.bf16.mxu0 (!%p166_p10), %vm471_vm0, %v960_v5  ;;  %v969_v19 = vld [vmem:[%s1347_s1 + $0xd8] sm:$0xff] (!%p166_p10)   ;;  %v973_v25 = vld [vmem:[%s1347_s1 + $0xe0] sm:$0xff] (!%p166_p10)   ;;  %v977_v33 = vld [vmem:[%s1347_s1 + $0xe8] sm:$0xff] (!%p166_p10)   ;;  %v215_v52 = vsub.s32 (!%p166_p10), 0, %v214_v51  ;;  %v223_v54 = vsub.s32 (!%p166_p10), 2, %v214_v51  ;;  %v219_v55 = vsub.s32 (!%p166_p10), 1, %v214_v51 }
  0x14   : > { %894 = vmatprep.subr.msk.bf16.mxu1 (!%p166_p10), %vm471_vm0, %v961_v7  ;;  %v970_v20 = vld [vmem:[%s1347_s1 + $0x18] sm:$0xff] (!%p166_p10)   ;;  %v974_v26 = vld [vmem:[%s1347_s1 + $0x20] sm:$0xff] (!%p166_p10)   ;;  %v978_v34 = vld [vmem:[%s1347_s1 + $0x28] sm:$0xff] (!%p166_p10)   ;;  %v227_v56 = vsub.s32 (!%p166_p10), 3, %v214_v51  ;;  %s1002_s18 = sshll.u32 (!%p166_p10), %s1078_s11, 4  ;;  %s1003_s18 = int_to_ptr.vmem [resolvable:$false] %s1002_s18 }
  0x15   : > { %v971_v21 = vld [vmem:[%s1347_s1 + $0x98] sm:$0xff] (!%p166_p10)   ;;  %v485_v22 = vsel (!%p166_p10), %vm471_vm0, %v970_v20, 0  ;;  %v975_v27 = vld [vmem:[%s1347_s1 + $0xa0] sm:$0xff] (!%p166_p10)   ;;  %v488_v30 = vsel (!%p166_p10), %vm471_vm0, %v974_v26, 0  ;;  %v979_v35 = vld [vmem:[%s1347_s1 + $0xa8] sm:$0xff] (!%p166_p10)   ;;  %v491_v36 = vsel (!%p166_p10), %vm471_vm0, %v978_v34, 0 }
  0x16   : > { %s196_s10 = scalar_select %p195_p11, %s1068_s15, 1  ;;  %v533_v24 = vsel %vm471_vm0, %v971_v21, 0  ;;  %v536_v32 = vsel %vm471_vm0, %v975_v27, 0  ;;  %v980_v37 = vld [vmem:[%s1347_s1 + $0x70] sm:$0xff]   ;;  %v539_v38 = vsel %vm471_vm0, %v979_v35, 0  ;;  %v984_v43 = vld [vmem:[%s1347_s1 + $0x78] sm:$0xff]  }
  0x17   : > { %v981_v39 = vld [vmem:[%s1347_s1 + $0xf0] sm:$0xff]   ;;  %v985_v45 = vld [vmem:[%s1347_s1 + $0xf8] sm:$0xff]   ;;  %v211_v53 = vld [vmem:[%s1348_s2] sm:$0xf]  ;;  %s702_s15 = scalar_lea.sflag [#allocation3], %s192_s29  ;;  %s1004_s19 = scalar_lea.vmem %s1003_s18, 1024 }
  0x18   : > { %s808_s23 = sshll.u32 %s196_s10, 3  ;;  %v982_v40 = vld [vmem:[%s1347_s1 + $0x30] sm:$0xff]   ;;  %v986_v46 = vld [vmem:[%s1347_s1 + $0x38] sm:$0xff]   ;;  %v216_v57 = vrot.slane %v211_v53, %v215_v52  ;;  %v224_v58 = vrot.slane %v211_v53, %v223_v54  ;;  %v220_v59 = vrot.slane %v211_v53, %v219_v55  ;;  %v228_v60 = vrot.slane %v211_v53, %v227_v56 }
  0x19   : > { %s201_s5 = scalar_lea.vmem %s1346_s0, %s808_s23  ;;  %v983_v41 = vld [vmem:[%s1347_s1 + $0xb0] sm:$0xff]   ;;  %v494_v42 = vsel %vm471_vm0, %v982_v40, 0  ;;  %v987_v47 = vld [vmem:[%s1347_s1 + $0xb8] sm:$0xff]   ;;  %v497_v48 = vsel %vm471_vm0, %v986_v46, 0 }
  0x1a   : > { %852 = vmatpush3.bf16.xpose.msra.mxu0 %v479_v10  ;;  %v245_v28 = vld [vmem:[%s201_s5] sm:$0xff]  ;;  %v542_v44 = vsel %vm471_vm0, %v983_v41, 0  ;;  %v545_v49 = vsel %vm471_vm0, %v987_v47, 0  ;;  %s194_s5 = scalar_lea.vmem [#allocation2], %s807_s30 }
  0x1b   : > { %870 = vmatpush3.bf16.xpose.msra.mxu1 %v527_v12  ;;  %887 = vmatprep.subr.msk.bf16.mxu0 %vm471_vm0, %v964_v11  ;;  %v246_v29 = vpack.c.bf16 %v245_v28, %v245_v28  ;;  %s716_s6 = sshll.u32 %s194_s5, 4  ;;  %s1301_s6 = int_to_ptr.vmem [resolvable:$true] %s716_s6 }
  0x1c   : > { %895 = vmatprep.subr.msk.bf16.mxu1 %vm471_vm0, %v965_v13  ;;  %s998_s10 = scalar_lea.vmem %s1301_s6, 512  ;;  %p1005_p1 = scmp.lt.s32.totalorder %s1301_s6, %s1003_s18 }
  0x1d   : > { %865 = vmatprep.mubr.msk.bf16.mxu0 %vm471_vm0, %v246_v29  ;;  %883 = vmatprep.mubr.msk.bf16.mxu1 %vm471_vm0, %v246_v29  ;;  %p999_p12 = scmp.ne.s32.totalorder %s1301_s6, %s998_s10  ;;  %p1006_p2 = scmp.lt.s32.totalorder %s1004_s19, %s998_s10 }
  0x1f   : > { %p1000_p13 = pnand %p999_p12, %p1139_p4  ;;  %p1007_p3 = por %p1006_p2, %p1005_p1 }
  0x21   : > { %p1001_p0 = pneg %p1000_p13 }
  0x22   : > { %854 = vmatpush3.bf16.xpose.msra.mxu0 %v482_v16 }
  0x23   : > { %872 = vmatpush3.bf16.xpose.msra.mxu1 %v530_v18  ;;  %888 = vmatprep.subr.msk.bf16.mxu0 %vm471_vm0, %v968_v17  ;;  %p1008_p5 = pnand %p1007_p3, %p1001_p0 }
  0x24   : > { %896 = vmatprep.subr.msk.bf16.mxu1 %vm471_vm0, %v969_v19 }
  0x2a   : > { %856 = vmatpush3.bf16.xpose.msra.mxu0 %v485_v22 }
  0x2b   : > { %874 = vmatpush3.bf16.xpose.msra.mxu1 %v533_v24  ;;  %889 = vmatprep.subr.msk.bf16.mxu0 %vm471_vm0, %v972_v23 }
  0x2c   : > { %897 = vmatprep.subr.msk.bf16.mxu1 %vm471_vm0, %v973_v25 }
  0x32   : > { %858 = vmatpush3.bf16.xpose.msra.mxu0 %v488_v30 }
  0x33   : > { %876 = vmatpush3.bf16.xpose.msra.mxu1 %v536_v32  ;;  %890 = vmatprep.subr.msk.bf16.mxu0 %vm471_vm0, %v976_v31 }
  0x34   : > { %898 = vmatprep.subr.msk.bf16.mxu1 %vm471_vm0, %v977_v33 }
  0x3a   : > { %860 = vmatpush3.bf16.xpose.msra.mxu0 %v491_v36 }
  0x3b   : > { %878 = vmatpush3.bf16.xpose.msra.mxu1 %v539_v38  ;;  %891 = vmatprep.subr.msk.bf16.mxu0 %vm471_vm0, %v980_v37 }
  0x3c   : > { %899 = vmatprep.subr.msk.bf16.mxu1 %vm471_vm0, %v981_v39 }
  0x42   : > { %862 = vmatpush3.bf16.xpose.msra.mxu0 %v494_v42 }
  0x43   : > { %880 = vmatpush3.bf16.xpose.msra.mxu1 %v542_v44  ;;  %892 = vmatprep.subr.msk.bf16.mxu0 %vm471_vm0, %v984_v43 }
  0x44   : > { %900 = vmatprep.subr.msk.bf16.mxu1 %vm471_vm0, %v985_v45 }
  0x4a   : > { %864 = vmatpush3.bf16.xpose.msra.mxu0 %v497_v48 }
  0x4b   : > { %882 = vmatpush3.bf16.xpose.msra.mxu1 %v545_v49 }
  0x51   : > { %866 = vmatmul.mubr.msk.bf16.vlgmr.msra.gmra.mrb[0].mxu0 %vm471_vm0, %v246_v29 }
  0x52   : > { %884 = vmatmul.mubr.msk.bf16.vlgmr.msra.gmra.mrb[0].mxu1 %vm471_vm0, %v246_v29 }
 0x124   : > { %v605_v61 = vpop.f32.mrb[0].mxu0 }
 0x125   : > { %v653_v62 = vadd.f32 %v605_v61, %v216_v57  ;;  %v646_v63 = vpop.f32.mrb[0].mxu1  ;;  %v607_v0 = vpop.f32.mrb[1].mxu0 }
 0x126   : > { %v655_v1 = vadd.f32 %v646_v63, %v224_v58  ;;  %v654_v2 = vadd.f32 %v607_v0, %v220_v59  ;;  %v648_v3 = vpop.f32.mrb[1].mxu1  ;;  %v609_v4 = vpop.f32.mrb[2].mxu0 }
 0x127   : > { %v656_v5 = vadd.f32 %v648_v3, %v228_v60  ;;  %v650_v6 = vpop.f32.mrb[2].mxu1  ;;  %v610_v7 = vpop.f32.mrb[3].mxu0 }
 0x128   : > { %v651_v8 = vpop.f32.mrb[3].mxu1  ;;  %v668_v9 = vmax.f32 %v653_v62, %v654_v2 }
 0x129   : > { %v669_v10 = vmax.f32 %v655_v1, %v656_v5 }
 0x12b   : > { %v670_v11 = vmax.f32 %v668_v9, %v669_v10 }
 0x12d   : > { %671 = vmax.xlane.f32.xlu0 %v670_v11 }
 0x1ba   : > { %v672_v12 = vpop.xlane.xlu0 %671 }
 0x1bb   : > { %v673_v13 = vsub.f32 %v653_v62, %v672_v12  ;;  %v674_v14 = vsub.f32 %v654_v2, %v672_v12  ;;  %v675_v15 = vsub.f32 %v655_v1, %v672_v12  ;;  %v676_v16 = vsub.f32 %v656_v5, %v672_v12 }
 0x1bd   : > { %v677_v17 = vmul.f32 1.442695, %v673_v13  ;;  %v679_v18 = vmul.f32 1.442695, %v674_v14  ;;  %v681_v19 = vmul.f32 1.442695, %v675_v15 }
 0x1be   : > { %v683_v20 = vmul.f32 1.442695, %v676_v16 }
 0x1bf   : > { %988 = vpow2.f32 %v677_v17 }
 0x1c0   : > { %990 = vpow2.f32 %v679_v18 }
 0x1c1   : > { %992 = vpow2.f32 %v681_v19 }
 0x1c2   : > { %994 = vpow2.f32 %v683_v20 }
 0x1c9   : > { %v989_v21 = vpop.eup %988 }
 0x1ca   : > { %v991_v22 = vpop.eup %990 }
 0x1cb   : > { %v685_v23 = vadd.f32 %v991_v22, %v989_v21  ;;  %v993_v24 = vpop.eup %992 }
 0x1cc   : > { %v995_v26 = vpop.eup %994 }
 0x1cd   : > { %v686_v25 = vadd.f32 %v993_v24, %v685_v23 }
 0x1cf   : > { %v687_v27 = vadd.f32 %v995_v26, %v686_v25 }
 0x1d1   : > { %688 = vadd.xlane.f32.xlu0 %v687_v27 }
 0x25e   : > { %v689_v28 = vpop.xlane.xlu0 %688 }
 0x25f   : > { %996 = vlog2.f32 %v689_v28 }
 0x269   : > { %v997_v29 = vpop.eup %996 }
 0x26a   : > { %v691_v30 = vmul.f32 0.6931472, %v997_v29 }
 0x26c   : > { %v692_v31 = vadd.f32 %v691_v30, %v672_v12 }
 0x26e   : > { %v693_v32 = vsub.f32 %v653_v62, %v692_v31  ;;  %v694_v33 = vsub.f32 %v654_v2, %v692_v31  ;;  %v695_v34 = vsub.f32 %v655_v1, %v692_v31  ;;  %v696_v35 = vsub.f32 %v656_v5, %v692_v31 }
 0x270   : > { %697 = vst [vmem:[%s194_s5] sm:$0xff] %v693_v32  ;;  %698 = vst [vmem:[%s194_s5 + $0x8] sm:$0xff] %v694_v33 }
 0x271   : > { %699 = vst [vmem:[%s194_s5 + $0x10] sm:$0xff] %v695_v34  ;;  %700 = vst [vmem:[%s194_s5 + $0x18] sm:$0xff] %v696_v35 }
 0x272   : > { %1011 = shalt.err (!%p1008_p5)
}
 0x273   : > { %s1012_s21 = scalar_lea.hbm %s1299_s9, 512  ;;  %s1016_s27 = scalar_lea.hbm %s1349_s3, 1024 }
 0x274   : > { %p1013_p6 = scmp.ne.s32.totalorder %s1299_s9, %s1012_s21  ;;  %p1017_p10 = scmp.lt.u32.totalorder %s1299_s9, %s1349_s3 }
 0x275   : > { %p1018_p11 = scmp.lt.u32.totalorder %s1016_s27, %s1012_s21  ;;  %p1020_p13 = scmp.lt.u32.totalorder %s1012_s21, %s1299_s9 }
 0x276   : > { %p1014_p7 = pnand %p1013_p6, %p1139_p4 }
 0x277   : > { %p1019_p12 = por %p1018_p11, %p1017_p10 }
 0x278   : > { %p1015_p9 = pneg %p1014_p7 }
 0x279   : > { %p1021_p0 = por %p1020_p13, %p1019_p12 }
 0x27b   : > { %p1022_p1 = pnand %p1021_p0, %p1015_p9 }
 0x27d   : > { %1025 = shalt.err (!%p1022_p1)
}
 0x27e   : > { %901 = dma.vmem_to_hbm [thread:$0]  (%p1139_p4), %s1301_s6, 512, %s1299_s9, %s702_s15  }
 0x27f PF: > { %p907_p2 = scmp.ge.s32.totalorder %s1076_s17, 2  ;;  %s728_s30 = sand.u32 1, %s1056_s12  }
 0x280   : > { %s729_s4 = scalar_lea.sflag [#allocation3], %s728_s30 }
 0x281   : > { %p904_p3 = pnand %p907_p2, %p1146_p8 }
 0x283   : > { %1051 = dma.done.wait (!%p904_p3), %s729_s4, 512  }
 0x284   : > { %1053 = vsyncadd (!%p904_p3), %s729_s4, 4294966784  ;;  %s16_s17 = sadd.s32 1, %s1076_s17   ;;  %s1352_s12 = smov %s1060_s13 }
 0x285   : > { %p13_p5 = scmp.ge.s32.totalorder %s16_s17, 4   ;;  %s1353_s13 = smov %s1064_s14 }
 0x286   : > { %s1354_s14 = smov %s1152_s25  ;;  %s1355_s15 = smov %s1072_s16 }
 0x287   : > { %s1356_s16 = smov %s1358_s20  ;;  %15 = sbr.rel (!%p13_p5) target bundleno = 4 (0x4), region = 78 }
 0x28e   :  { %734 = vsyncpa [#allocation3], 1 }
 0x28f   :  { %736 = vsyncpa [#allocation3 + $0x1], 1 }

</bundles_post_ra>
